<compile_context>
chip_gen: v7x
topology: tpu7x:2x2x1
jax: 0.10.0
libtpu: 0.0.40
codegen_flags: <defaults>
</compile_context>

<pallas_src>
import functools

import jax
import jax.numpy as jnp
from jax import lax
from jax.experimental import pallas as pl
from jax.experimental.pallas import tpu as pltpu


def _gru_decoder_kernel(gi_ref, h0_ref, w_ref, bn_ref, out_ref, hout_ref,
                        h_scratch, *, last_c, last_tt, unroll):
    """One (batch-tile, time-chunk) grid step of the GRU recurrence.

    gi_ref   : (T, bt, 3H)  precomputed x@W_ih^T + b_ih (+ b_hh for r,z), r|z|n
    h0_ref   : (bt, H)      initial hidden state for this batch tile
    w_ref    : (H, 3H)      W_hh^T, gate-fused along the lane axis (r|z|n)
    bn_ref   : (1, H)       b_hh of the n gate (must stay inside the r*(...) term)
    out_ref  : (T, bt, H)   per-timestep hidden states (time-major)
    hout_ref : (bt, H)      hidden state at the last *real* timestep
    h_scratch: (bt, H)      carried hidden state across time chunks
    """
    # New batch tile begins -> (re)load the initial hidden state.
    @pl.when(pl.program_id(1) == 0)
    def _():
        h_scratch[...] = h0_ref[...]

    T = out_ref.shape[0]
    bt, H = h_scratch.shape
    c = pl.program_id(1)

    # Hoisted out of the timestep loop: fused recurrent weight and the n-gate
    # bias broadcast (JAX does not CSE broadcast_in_dim inside unrolled loops).
    w = w_ref[...]                                        # (H, 3H)
    b_n = jnp.broadcast_to(bn_ref[...], (bt, H))          # built once per chunk

    def step(tt, h):
        gi = gi_ref[tt]                                   # (bt, 3H)
        # Single fused recurrent matmul on the MXU: one weight push / result
        # pop per timestep instead of three.
        gh = jnp.dot(h, w, preferred_element_type=jnp.float32)   # (bt, 3H)
        # r|z as one fused (bt, 2H) slab through the EUP sigmoid.
        rz = jax.nn.sigmoid(gi[:, :2 * H] + gh[:, :2 * H])
        r = rz[:, :H]
        z = rz[:, H:]
        n = jnp.tanh(gi[:, 2 * H:] + r * (gh[:, 2 * H:] + b_n))
        h_new = n + z * (h - n)                           # == (1-z)*n + z*h
        out_ref[tt] = h_new.astype(out_ref.dtype)

        # Dedicated final-hidden output, captured at the last *real* timestep
        # (zero-padded trailing steps never touch it).
        @pl.when((c == last_c) & (tt == last_tt))
        def _():
            hout_ref[...] = h_new.astype(hout_ref.dtype)

        return h_new

    h_final = lax.fori_loop(0, T, step, h_scratch[...], unroll=unroll)
    # After the final (partially padded) chunk h_scratch may be contaminated by
    # padded steps; it is never read again (hout_ref is authoritative).
    h_scratch[...] = h_final


def _ceil_to(x, m):
    return ((x + m - 1) // m) * m


def decoder_forward(decoder_input, hidden, params, *, time_chunk=16):
    """Mirrors Decoder.forward: embedding -> GRU(batch_first=True).

    Returns (decoder_output (b, s, H), decoder_hidden (1, b, H)).
    """
    emb_table = params["embedding"]            # (V, E)
    w_ih = params["w_ih"]                      # (3H, E)  torch layout, gates r|z|n
    w_hh = params["w_hh"]                      # (3H, H)
    b_ih = params["b_ih"]                      # (3H,)
    b_hh = params["b_hh"]                      # (3H,)

    b, s = decoder_input.shape
    H = w_ih.shape[0] // 3

    # ---- glue (plain JAX): embedding gather + hoisted input projection ----
    # TODO(synk): the embedding gather and the final batch-first transpose are
    # left to XLA; a Pallas DMA-gather buys nothing at these sizes.
    embed = jnp.take(emb_table, decoder_input, axis=0)        # (b, s, E)
    gi = jnp.einsum("bse,ge->bsg", embed, w_ih,
                    preferred_element_type=jnp.float32)       # (b, s, 3H), r|z|n
    # b_hh for r and z sits outside the r*(...) term -> fold it in here; the
    # n-gate recurrent bias must stay in-kernel.
    bias = b_ih + jnp.concatenate([b_hh[:2 * H], jnp.zeros((H,), b_hh.dtype)])
    gi = gi + bias
    gi_tm = jnp.transpose(gi, (1, 0, 2))                      # (s, b, 3H) time-major

    # Fused recurrent weight: h @ W_hh^T for all three gates in one MXU pass.
    w_fused = jnp.transpose(w_hh).astype(jnp.float32)         # (H, 3H), r|z|n
    b_hh_n = b_hh[2 * H:].reshape(1, H).astype(jnp.float32)   # (1, H)

    # ---- padding / tiling ----
    T = int(min(time_chunk, _ceil_to(s, 8)))                  # time chunk per grid step
    s_pad = _ceil_to(s, T)
    b_pad = _ceil_to(b, 8)
    if b_pad > 256:
        # Very large batches: 128-row tiles; "parallel" batch axis can then be
        # sharded across TensorCores on multi-TC parts (v7x megacore).
        b_pad = _ceil_to(b, 128)
        bt = 128
    else:
        bt = b_pad                                            # single tile (v5e/v6e: 1 TC)
    n_bt = b_pad // bt
    n_ct = s_pad // T

    gi_tm = jnp.pad(gi_tm, ((0, s_pad - s), (0, b_pad - b), (0, 0)))
    h0 = jnp.pad(hidden[0].astype(jnp.float32), ((0, b_pad - b), (0, 0)))

    last_c, last_tt = (s - 1) // T, (s - 1) % T
    kernel = functools.partial(_gru_decoder_kernel,
                               last_c=last_c, last_tt=last_tt,
                               unroll=min(T, 8))

    out_tm, h_last = pl.pallas_call(
        kernel,
        out_shape=(
            jax.ShapeDtypeStruct((s_pad, b_pad, H), jnp.float32),   # all h_t (time-major)
            jax.ShapeDtypeStruct((b_pad, H), jnp.float32),          # final hidden
        ),
        grid_spec=pltpu.PrefetchScalarGridSpec(
            num_scalar_prefetch=0,
            grid=(n_bt, n_ct),
            in_specs=[
                pl.BlockSpec((T, bt, 3 * H), lambda i, c: (c, i, 0)),  # packed gi chunk
                pl.BlockSpec((bt, H), lambda i, c: (i, 0)),            # h0 (batch tile)
                pl.BlockSpec((H, 3 * H), lambda i, c: (0, 0)),         # W_hh^T fused
                pl.BlockSpec((1, H), lambda i, c: (0, 0)),             # b_hh (n gate)
            ],
            out_specs=[
                pl.BlockSpec((T, bt, H), lambda i, c: (c, i, 0)),
                pl.BlockSpec((bt, H), lambda i, c: (i, 0)),
            ],
            scratch_shapes=[pltpu.VMEM((bt, H), jnp.float32)],         # carried hidden
        ),
        compiler_params=pltpu.CompilerParams(
            dimension_semantics=("parallel", "arbitrary"),
            vmem_limit_bytes=64 * 1024 * 1024),
    )(gi_tm, h0, w_fused, b_hh_n)

    decoder_output = jnp.transpose(out_tm[:s, :b], (1, 0, 2))   # (b, s, H)
    decoder_hidden = h_last[:b][None]                           # (1, b, H)
    return decoder_output, decoder_hidden


def _reference_forward(decoder_input, hidden, params):
    """Pure-JAX reference (PyTorch GRU semantics) for the numerical check."""
    emb = jnp.take(params["embedding"], decoder_input, axis=0)  # (b, s, E)
    w_ih, w_hh = params["w_ih"], params["w_hh"]
    b_ih, b_hh = params["b_ih"], params["b_hh"]
    H = w_hh.shape[1]
    h = hidden[0]
    outs = []
    for t in range(emb.shape[1]):
        x = emb[:, t, :]
        gi = x @ w_ih.T + b_ih
        gh = h @ w_hh.T + b_hh
        r = jax.nn.sigmoid(gi[:, :H] + gh[:, :H])
        z = jax.nn.sigmoid(gi[:, H:2 * H] + gh[:, H:2 * H])
        n = jnp.tanh(gi[:, 2 * H:] + r * gh[:, 2 * H:])
        h = (1 - z) * n + z * h
        outs.append(h)
    out = jnp.stack(outs, axis=1)                               # (b, s, H)
    return out, h[None]                                         # (1, b, H)


if __name__ == "__main__":
    # Small shapes consistent with the module.
    B, S = 2, 8
    E, H, VOCAB = 16, 32, 20

    key = jax.random.PRNGKey(0)
    k_emb, k_wih, k_whh, k_bih, k_bhh, k_tok, k_h0 = jax.random.split(key, 7)

    params = {
        "embedding": jax.random.normal(k_emb, (VOCAB, E), jnp.float32) * 0.1,
        "w_ih":      jax.random.normal(k_wih, (3 * H, E), jnp.float32) * 0.1,
        "w_hh":      jax.random.normal(k_whh, (3 * H, H), jnp.float32) * 0.1,
        "b_ih":      jax.random.normal(k_bih, (3 * H,), jnp.float32) * 0.1,
        "b_hh":      jax.random.normal(k_bhh, (3 * H,), jnp.float32) * 0.1,
    }

    decoder_input = jax.random.randint(k_tok, (B, S), 0, VOCAB, jnp.int32)
    hidden = jax.random.normal(k_h0, (1, B, H), jnp.float32)

    out, h_n = decoder_forward(decoder_input, hidden, params)
    out = jax.block_until_ready(out)
    h_n = jax.block_until_ready(h_n)

    ref_out, ref_h = _reference_forward(decoder_input, hidden, params)
    assert out.shape == (B, S, H)
    assert h_n.shape == (1, B, H)
    assert jnp.allclose(out, ref_out, atol=1e-5, rtol=1e-5), "output mismatch vs reference"
    assert jnp.allclose(h_n, ref_h, atol=1e-5, rtol=1e-5), "hidden mismatch vs reference"

    print("KERNEL_OK")
</pallas_src>

<mosaic_0001>
module attributes {stable_mosaic.version = 11 : i64} {
  func.func @_gru_decoder_kernel(%arg0: i32, %arg1: i32, %arg2: memref<8x8x96xf32, #tpu.memory_space<vmem>>, %arg3: memref<8x32xf32, #tpu.memory_space<vmem>>, %arg4: memref<32x96xf32, #tpu.memory_space<vmem>>, %arg5: memref<1x32xf32, #tpu.memory_space<vmem>>, %arg6: memref<8x8x32xf32, #tpu.memory_space<vmem>>, %arg7: memref<8x32xf32, #tpu.memory_space<vmem>>, %arg8: memref<8x32xf32, #tpu.memory_space<vmem>>) attributes {dimension_semantics = [#tpu.dimension_semantics<parallel>, #tpu.dimension_semantics<arbitrary>], iteration_bounds = array<i64: 1, 1>, scalar_prefetch = 0 : i64, scratch_operands = 1 : i64, tpu.core_type = #tpu.core_type<tc>, window_params = [{transform_indices = @transform_0, window_bounds = array<i64: 8, 8, 96>}, {transform_indices = @transform_1, window_bounds = array<i64: 8, 32>}, {pipeline_mode = #tpu.pipeline_mode<synchronous>, transform_indices = @transform_2, window_bounds = array<i64: 32, 96>}, {pipeline_mode = #tpu.pipeline_mode<synchronous>, transform_indices = @transform_3, window_bounds = array<i64: 1, 32>}, {transform_indices = @transform_4, window_bounds = array<i64: 8, 8, 32>}, {transform_indices = @transform_5, window_bounds = array<i64: 8, 32>}]} {
    %c0_i32 = arith.constant 0 : i32
    %0 = arith.cmpi eq, %arg1, %c0_i32 : i32
    %1 = arith.extui %0 : i1 to i32
    %c0_i32_0 = arith.constant 0 : i32
    %2 = arith.cmpi ne, %1, %c0_i32_0 : i32
    scf.if %2 {
      %c0_80 = arith.constant 0 : index
      %c0_81 = arith.constant 0 : index
      %265 = vector.load %arg3[%c0_80, %c0_81] : memref<8x32xf32, #tpu.memory_space<vmem>>, vector<8x32xf32>
      %c0_82 = arith.constant 0 : index
      %c0_83 = arith.constant 0 : index
      %266 = vector.load %arg8[%c0_82, %c0_83] : memref<8x32xf32, #tpu.memory_space<vmem>>, vector<8x32xf32>
      tpu.vector_store %arg8[%c0_82, %c0_83], %265 {strides = array<i32>} : memref<8x32xf32, #tpu.memory_space<vmem>>, vector<8x32xf32>,
    } else {
    }
    %c0 = arith.constant 0 : index
    %c0_1 = arith.constant 0 : index
    %3 = vector.load %arg4[%c0, %c0_1] : memref<32x96xf32, #tpu.memory_space<vmem>>, vector<32x96xf32>
    %c0_2 = arith.constant 0 : index
    %c0_3 = arith.constant 0 : index
    %4 = vector.load %arg5[%c0_2, %c0_3] : memref<1x32xf32, #tpu.memory_space<vmem>>, vector<1x32xf32>
    %5 = vector.shape_cast %4 : vector<1x32xf32> to vector<1x32xf32>
    %6 = vector.broadcast %5 : vector<1x32xf32> to vector<8x32xf32>
    %c0_4 = arith.constant 0 : index
    %c0_5 = arith.constant 0 : index
    %7 = vector.load %arg8[%c0_4, %c0_5] : memref<8x32xf32, #tpu.memory_space<vmem>>, vector<8x32xf32>
    %c0_i32_6 = arith.constant 0 : i32
    %8 = arith.index_cast %c0_i32_6 : i32 to index
    %c0_7 = arith.constant 0 : index
    %c0_8 = arith.constant 0 : index
    %9 = vector.load %arg2[%8, %c0_7, %c0_8] : memref<8x8x96xf32, #tpu.memory_space<vmem>>, vector<1x8x96xf32>
    %10 = vector.shape_cast %9 : vector<1x8x96xf32> to vector<8x96xf32>
    %cst = arith.constant dense<0.000000e+00> : vector<8x96xf32>
    %11 = tpu.matmul %7, %3, %cst {dimension_numbers = #tpu.dot_dimension_numbers<[1], [0], [0], [1], [0, 0, 1, 1], [], []>} : vector<8x32xf32>, vector<32x96xf32>, vector<8x96xf32> -> vector<8x96xf32>
    %12 = vector.extract_strided_slice %10 {offsets = [0, 0], sizes = [8, 64], strides = [1, 1]} : vector<8x96xf32> to vector<8x64xf32>
    %13 = vector.extract_strided_slice %11 {offsets = [0, 0], sizes = [8, 64], strides = [1, 1]} : vector<8x96xf32> to vector<8x64xf32>
    %14 = arith.addf %12, %13 : vector<8x64xf32>
    %15 = arith.negf %14 : vector<8x64xf32>
    %16 = math.exp %15 : vector<8x64xf32>
    %cst_9 = arith.constant 1.000000e+00 : f32
    %17 = vector.broadcast %cst_9 : f32 to vector<8x64xf32>
    %18 = arith.addf %17, %16 : vector<8x64xf32>
    %19 = arith.divf %17, %18 : vector<8x64xf32>
    %20 = vector.extract_strided_slice %19 {offsets = [0, 0], sizes = [8, 32], strides = [1, 1]} : vector<8x64xf32> to vector<8x32xf32>
    %21 = vector.extract_strided_slice %19 {offsets = [0, 32], sizes = [8, 32], strides = [1, 1]} : vector<8x64xf32> to vector<8x32xf32>
    %22 = vector.extract_strided_slice %10 {offsets = [0, 64], sizes = [8, 32], strides = [1, 1]} : vector<8x96xf32> to vector<8x32xf32>
    %23 = vector.extract_strided_slice %11 {offsets = [0, 64], sizes = [8, 32], strides = [1, 1]} : vector<8x96xf32> to vector<8x32xf32>
    %24 = arith.addf %23, %6 : vector<8x32xf32>
    %25 = arith.mulf %20, %24 : vector<8x32xf32>
    %26 = arith.addf %22, %25 : vector<8x32xf32>
    %27 = math.tanh %26 : vector<8x32xf32>
    %28 = arith.subf %7, %27 : vector<8x32xf32>
    %29 = arith.mulf %21, %28 : vector<8x32xf32>
    %30 = arith.addf %27, %29 : vector<8x32xf32>
    %31 = arith.index_cast %c0_i32_6 : i32 to index
    %c0_10 = arith.constant 0 : index
    %c0_11 = arith.constant 0 : index
    %32 = vector.load %arg6[%31, %c0_10, %c0_11] : memref<8x8x32xf32, #tpu.memory_space<vmem>>, vector<1x8x32xf32>
    %33 = vector.shape_cast %32 : vector<1x8x32xf32> to vector<8x32xf32>
    %34 = vector.shape_cast %30 : vector<8x32xf32> to vector<1x8x32xf32>
    tpu.vector_store %arg6[%31, %c0_10, %c0_11], %34 {strides = array<i32>} : memref<8x8x32xf32, #tpu.memory_space<vmem>>, vector<1x8x32xf32>,
    %c0_i32_12 = arith.constant 0 : i32
    %35 = arith.cmpi eq, %arg1, %c0_i32_12 : i32
    %c7_i32 = arith.constant 7 : i32
    %36 = arith.cmpi eq, %c0_i32_6, %c7_i32 : i32
    %37 = arith.andi %35, %36 : i1
    %38 = arith.extui %37 : i1 to i32
    %c0_i32_13 = arith.constant 0 : i32
    %39 = arith.cmpi ne, %38, %c0_i32_13 : i32
    scf.if %39 {
      %c0_80 = arith.constant 0 : index
      %c0_81 = arith.constant 0 : index
      %265 = vector.load %arg7[%c0_80, %c0_81] : memref<8x32xf32, #tpu.memory_space<vmem>>, vector<8x32xf32>
      tpu.vector_store %arg7[%c0_80, %c0_81], %30 {strides = array<i32>} : memref<8x32xf32, #tpu.memory_space<vmem>>, vector<8x32xf32>,
    } else {
    }
    %c1_i32 = arith.constant 1 : i32
    %40 = arith.index_cast %c1_i32 : i32 to index
    %c0_14 = arith.constant 0 : index
    %c0_15 = arith.constant 0 : index
    %41 = vector.load %arg2[%40, %c0_14, %c0_15] : memref<8x8x96xf32, #tpu.memory_space<vmem>>, vector<1x8x96xf32>
    %42 = vector.shape_cast %41 : vector<1x8x96xf32> to vector<8x96xf32>
    %cst_16 = arith.constant dense<0.000000e+00> : vector<8x96xf32>
    %43 = tpu.matmul %30, %3, %cst_16 {dimension_numbers = #tpu.dot_dimension_numbers<[1], [0], [0], [1], [0, 0, 1, 1], [], []>} : vector<8x32xf32>, vector<32x96xf32>, vector<8x96xf32> -> vector<8x96xf32>
    %44 = vector.extract_strided_slice %42 {offsets = [0, 0], sizes = [8, 64], strides = [1, 1]} : vector<8x96xf32> to vector<8x64xf32>
    %45 = vector.extract_strided_slice %43 {offsets = [0, 0], sizes = [8, 64], strides = [1, 1]} : vector<8x96xf32> to vector<8x64xf32>
    %46 = arith.addf %44, %45 : vector<8x64xf32>
    %47 = arith.negf %46 : vector<8x64xf32>
    %48 = math.exp %47 : vector<8x64xf32>
    %cst_17 = arith.constant 1.000000e+00 : f32
    %49 = vector.broadcast %cst_17 : f32 to vector<8x64xf32>
    %50 = arith.addf %49, %48 : vector<8x64xf32>
    %51 = arith.divf %49, %50 : vector<8x64xf32>
    %52 = vector.extract_strided_slice %51 {offsets = [0, 0], sizes = [8, 32], strides = [1, 1]} : vector<8x64xf32> to vector<8x32xf32>
    %53 = vector.extract_strided_slice %51 {offsets = [0, 32], sizes = [8, 32], strides = [1, 1]} : vector<8x64xf32> to vector<8x32xf32>
    %54 = vector.extract_strided_slice %42 {offsets = [0, 64], sizes = [8, 32], strides = [1, 1]} : vector<8x96xf32> to vector<8x32xf32>
    %55 = vector.extract_strided_slice %43 {offsets = [0, 64], sizes = [8, 32], strides = [1, 1]} : vector<8x96xf32> to vector<8x32xf32>
    %56 = arith.addf %55, %6 : vector<8x32xf32>
    %57 = arith.mulf %52, %56 : vector<8x32xf32>
    %58 = arith.addf %54, %57 : vector<8x32xf32>
    %59 = math.tanh %58 : vector<8x32xf32>
    %60 = arith.subf %30, %59 : vector<8x32xf32>
    %61 = arith.mulf %53, %60 : vector<8x32xf32>
    %62 = arith.addf %59, %61 : vector<8x32xf32>
    %63 = arith.index_cast %c1_i32 : i32 to index
    %c0_18 = arith.constant 0 : index
    %c0_19 = arith.constant 0 : index
    %64 = vector.load %arg6[%63, %c0_18, %c0_19] : memref<8x8x32xf32, #tpu.memory_space<vmem>>, vector<1x8x32xf32>
    %65 = vector.shape_cast %64 : vector<1x8x32xf32> to vector<8x32xf32>
    %66 = vector.shape_cast %62 : vector<8x32xf32> to vector<1x8x32xf32>
    tpu.vector_store %arg6[%63, %c0_18, %c0_19], %66 {strides = array<i32>} : memref<8x8x32xf32, #tpu.memory_space<vmem>>, vector<1x8x32xf32>,
    %c0_i32_20 = arith.constant 0 : i32
    %67 = arith.cmpi eq, %arg1, %c0_i32_20 : i32
    %c7_i32_21 = arith.constant 7 : i32
    %68 = arith.cmpi eq, %c1_i32, %c7_i32_21 : i32
    %69 = arith.andi %67, %68 : i1
    %70 = arith.extui %69 : i1 to i32
    %c0_i32_22 = arith.constant 0 : i32
    %71 = arith.cmpi ne, %70, %c0_i32_22 : i32
    scf.if %71 {
      %c0_80 = arith.constant 0 : index
      %c0_81 = arith.constant 0 : index
      %265 = vector.load %arg7[%c0_80, %c0_81] : memref<8x32xf32, #tpu.memory_space<vmem>>, vector<8x32xf32>
      tpu.vector_store %arg7[%c0_80, %c0_81], %62 {strides = array<i32>} : memref<8x32xf32, #tpu.memory_space<vmem>>, vector<8x32xf32>,
    } else {
    }
    %c2_i32 = arith.constant 2 : i32
    %72 = arith.index_cast %c2_i32 : i32 to index
    %c0_23 = arith.constant 0 : index
    %c0_24 = arith.constant 0 : index
    %73 = vector.load %arg2[%72, %c0_23, %c0_24] : memref<8x8x96xf32, #tpu.memory_space<vmem>>, vector<1x8x96xf32>
    %74 = vector.shape_cast %73 : vector<1x8x96xf32> to vector<8x96xf32>
    %cst_25 = arith.constant dense<0.000000e+00> : vector<8x96xf32>
    %75 = tpu.matmul %62, %3, %cst_25 {dimension_numbers = #tpu.dot_dimension_numbers<[1], [0], [0], [1], [0, 0, 1, 1], [], []>} : vector<8x32xf32>, vector<32x96xf32>, vector<8x96xf32> -> vector<8x96xf32>
    %76 = vector.extract_strided_slice %74 {offsets = [0, 0], sizes = [8, 64], strides = [1, 1]} : vector<8x96xf32> to vector<8x64xf32>
    %77 = vector.extract_strided_slice %75 {offsets = [0, 0], sizes = [8, 64], strides = [1, 1]} : vector<8x96xf32> to vector<8x64xf32>
    %78 = arith.addf %76, %77 : vector<8x64xf32>
    %79 = arith.negf %78 : vector<8x64xf32>
    %80 = math.exp %79 : vector<8x64xf32>
    %cst_26 = arith.constant 1.000000e+00 : f32
    %81 = vector.broadcast %cst_26 : f32 to vector<8x64xf32>
    %82 = arith.addf %81, %80 : vector<8x64xf32>
    %83 = arith.divf %81, %82 : vector<8x64xf32>
    %84 = vector.extract_strided_slice %83 {offsets = [0, 0], sizes = [8, 32], strides = [1, 1]} : vector<8x64xf32> to vector<8x32xf32>
    %85 = vector.extract_strided_slice %83 {offsets = [0, 32], sizes = [8, 32], strides = [1, 1]} : vector<8x64xf32> to vector<8x32xf32>
    %86 = vector.extract_strided_slice %74 {offsets = [0, 64], sizes = [8, 32], strides = [1, 1]} : vector<8x96xf32> to vector<8x32xf32>
    %87 = vector.extract_strided_slice %75 {offsets = [0, 64], sizes = [8, 32], strides = [1, 1]} : vector<8x96xf32> to vector<8x32xf32>
    %88 = arith.addf %87, %6 : vector<8x32xf32>
    %89 = arith.mulf %84, %88 : vector<8x32xf32>
    %90 = arith.addf %86, %89 : vector<8x32xf32>
    %91 = math.tanh %90 : vector<8x32xf32>
    %92 = arith.subf %62, %91 : vector<8x32xf32>
    %93 = arith.mulf %85, %92 : vector<8x32xf32>
    %94 = arith.addf %91, %93 : vector<8x32xf32>
    %95 = arith.index_cast %c2_i32 : i32 to index
    %c0_27 = arith.constant 0 : index
    %c0_28 = arith.constant 0 : index
    %96 = vector.load %arg6[%95, %c0_27, %c0_28] : memref<8x8x32xf32, #tpu.memory_space<vmem>>, vector<1x8x32xf32>
    %97 = vector.shape_cast %96 : vector<1x8x32xf32> to vector<8x32xf32>
    %98 = vector.shape_cast %94 : vector<8x32xf32> to vector<1x8x32xf32>
    tpu.vector_store %arg6[%95, %c0_27, %c0_28], %98 {strides = array<i32>} : memref<8x8x32xf32, #tpu.memory_space<vmem>>, vector<1x8x32xf32>,
    %c0_i32_29 = arith.constant 0 : i32
    %99 = arith.cmpi eq, %arg1, %c0_i32_29 : i32
    %c7_i32_30 = arith.constant 7 : i32
    %100 = arith.cmpi eq, %c2_i32, %c7_i32_30 : i32
    %101 = arith.andi %99, %100 : i1
    %102 = arith.extui %101 : i1 to i32
    %c0_i32_31 = arith.constant 0 : i32
    %103 = arith.cmpi ne, %102, %c0_i32_31 : i32
    scf.if %103 {
      %c0_80 = arith.constant 0 : index
      %c0_81 = arith.constant 0 : index
      %265 = vector.load %arg7[%c0_80, %c0_81] : memref<8x32xf32, #tpu.memory_space<vmem>>, vector<8x32xf32>
      tpu.vector_store %arg7[%c0_80, %c0_81], %94 {strides = array<i32>} : memref<8x32xf32, #tpu.memory_space<vmem>>, vector<8x32xf32>,
    } else {
    }
    %c3_i32 = arith.constant 3 : i32
    %104 = arith.index_cast %c3_i32 : i32 to index
    %c0_32 = arith.constant 0 : index
    %c0_33 = arith.constant 0 : index
    %105 = vector.load %arg2[%104, %c0_32, %c0_33] : memref<8x8x96xf32, #tpu.memory_space<vmem>>, vector<1x8x96xf32>
    %106 = vector.shape_cast %105 : vector<1x8x96xf32> to vector<8x96xf32>
    %cst_34 = arith.constant dense<0.000000e+00> : vector<8x96xf32>
    %107 = tpu.matmul %94, %3, %cst_34 {dimension_numbers = #tpu.dot_dimension_numbers<[1], [0], [0], [1], [0, 0, 1, 1], [], []>} : vector<8x32xf32>, vector<32x96xf32>, vector<8x96xf32> -> vector<8x96xf32>
    %108 = vector.extract_strided_slice %106 {offsets = [0, 0], sizes = [8, 64], strides = [1, 1]} : vector<8x96xf32> to vector<8x64xf32>
    %109 = vector.extract_strided_slice %107 {offsets = [0, 0], sizes = [8, 64], strides = [1, 1]} : vector<8x96xf32> to vector<8x64xf32>
    %110 = arith.addf %108, %109 : vector<8x64xf32>
    %111 = arith.negf %110 : vector<8x64xf32>
    %112 = math.exp %111 : vector<8x64xf32>
    %cst_35 = arith.constant 1.000000e+00 : f32
    %113 = vector.broadcast %cst_35 : f32 to vector<8x64xf32>
    %114 = arith.addf %113, %112 : vector<8x64xf32>
    %115 = arith.divf %113, %114 : vector<8x64xf32>
    %116 = vector.extract_strided_slice %115 {offsets = [0, 0], sizes = [8, 32], strides = [1, 1]} : vector<8x64xf32> to vector<8x32xf32>
    %117 = vector.extract_strided_slice %115 {offsets = [0, 32], sizes = [8, 32], strides = [1, 1]} : vector<8x64xf32> to vector<8x32xf32>
    %118 = vector.extract_strided_slice %106 {offsets = [0, 64], sizes = [8, 32], strides = [1, 1]} : vector<8x96xf32> to vector<8x32xf32>
    %119 = vector.extract_strided_slice %107 {offsets = [0, 64], sizes = [8, 32], strides = [1, 1]} : vector<8x96xf32> to vector<8x32xf32>
    %120 = arith.addf %119, %6 : vector<8x32xf32>
    %121 = arith.mulf %116, %120 : vector<8x32xf32>
    %122 = arith.addf %118, %121 : vector<8x32xf32>
    %123 = math.tanh %122 : vector<8x32xf32>
    %124 = arith.subf %94, %123 : vector<8x32xf32>
    %125 = arith.mulf %117, %124 : vector<8x32xf32>
    %126 = arith.addf %123, %125 : vector<8x32xf32>
    %127 = arith.index_cast %c3_i32 : i32 to index
    %c0_36 = arith.constant 0 : index
    %c0_37 = arith.constant 0 : index
    %128 = vector.load %arg6[%127, %c0_36, %c0_37] : memref<8x8x32xf32, #tpu.memory_space<vmem>>, vector<1x8x32xf32>
    %129 = vector.shape_cast %128 : vector<1x8x32xf32> to vector<8x32xf32>
    %130 = vector.shape_cast %126 : vector<8x32xf32> to vector<1x8x32xf32>
    tpu.vector_store %arg6[%127, %c0_36, %c0_37], %130 {strides = array<i32>} : memref<8x8x32xf32, #tpu.memory_space<vmem>>, vector<1x8x32xf32>,
    %c0_i32_38 = arith.constant 0 : i32
    %131 = arith.cmpi eq, %arg1, %c0_i32_38 : i32
    %c7_i32_39 = arith.constant 7 : i32
    %132 = arith.cmpi eq, %c3_i32, %c7_i32_39 : i32
    %133 = arith.andi %131, %132 : i1
    %134 = arith.extui %133 : i1 to i32
    %c0_i32_40 = arith.constant 0 : i32
    %135 = arith.cmpi ne, %134, %c0_i32_40 : i32
    scf.if %135 {
      %c0_80 = arith.constant 0 : index
      %c0_81 = arith.constant 0 : index
      %265 = vector.load %arg7[%c0_80, %c0_81] : memref<8x32xf32, #tpu.memory_space<vmem>>, vector<8x32xf32>
      tpu.vector_store %arg7[%c0_80, %c0_81], %126 {strides = array<i32>} : memref<8x32xf32, #tpu.memory_space<vmem>>, vector<8x32xf32>,
    } else {
    }
    %c4_i32 = arith.constant 4 : i32
    %136 = arith.index_cast %c4_i32 : i32 to index
    %c0_41 = arith.constant 0 : index
    %c0_42 = arith.constant 0 : index
    %137 = vector.load %arg2[%136, %c0_41, %c0_42] : memref<8x8x96xf32, #tpu.memory_space<vmem>>, vector<1x8x96xf32>
    %138 = vector.shape_cast %137 : vector<1x8x96xf32> to vector<8x96xf32>
    %cst_43 = arith.constant dense<0.000000e+00> : vector<8x96xf32>
    %139 = tpu.matmul %126, %3, %cst_43 {dimension_numbers = #tpu.dot_dimension_numbers<[1], [0], [0], [1], [0, 0, 1, 1], [], []>} : vector<8x32xf32>, vector<32x96xf32>, vector<8x96xf32> -> vector<8x96xf32>
    %140 = vector.extract_strided_slice %138 {offsets = [0, 0], sizes = [8, 64], strides = [1, 1]} : vector<8x96xf32> to vector<8x64xf32>
    %141 = vector.extract_strided_slice %139 {offsets = [0, 0], sizes = [8, 64], strides = [1, 1]} : vector<8x96xf32> to vector<8x64xf32>
    %142 = arith.addf %140, %141 : vector<8x64xf32>
    %143 = arith.negf %142 : vector<8x64xf32>
    %144 = math.exp %143 : vector<8x64xf32>
    %cst_44 = arith.constant 1.000000e+00 : f32
    %145 = vector.broadcast %cst_44 : f32 to vector<8x64xf32>
    %146 = arith.addf %145, %144 : vector<8x64xf32>
    %147 = arith.divf %145, %146 : vector<8x64xf32>
    %148 = vector.extract_strided_slice %147 {offsets = [0, 0], sizes = [8, 32], strides = [1, 1]} : vector<8x64xf32> to vector<8x32xf32>
    %149 = vector.extract_strided_slice %147 {offsets = [0, 32], sizes = [8, 32], strides = [1, 1]} : vector<8x64xf32> to vector<8x32xf32>
    %150 = vector.extract_strided_slice %138 {offsets = [0, 64], sizes = [8, 32], strides = [1, 1]} : vector<8x96xf32> to vector<8x32xf32>
    %151 = vector.extract_strided_slice %139 {offsets = [0, 64], sizes = [8, 32], strides = [1, 1]} : vector<8x96xf32> to vector<8x32xf32>
    %152 = arith.addf %151, %6 : vector<8x32xf32>
    %153 = arith.mulf %148, %152 : vector<8x32xf32>
    %154 = arith.addf %150, %153 : vector<8x32xf32>
    %155 = math.tanh %154 : vector<8x32xf32>
    %156 = arith.subf %126, %155 : vector<8x32xf32>
    %157 = arith.mulf %149, %156 : vector<8x32xf32>
    %158 = arith.addf %155, %157 : vector<8x32xf32>
    %159 = arith.index_cast %c4_i32 : i32 to index
    %c0_45 = arith.constant 0 : index
    %c0_46 = arith.constant 0 : index
    %160 = vector.load %arg6[%159, %c0_45, %c0_46] : memref<8x8x32xf32, #tpu.memory_space<vmem>>, vector<1x8x32xf32>
    %161 = vector.shape_cast %160 : vector<1x8x32xf32> to vector<8x32xf32>
    %162 = vector.shape_cast %158 : vector<8x32xf32> to vector<1x8x32xf32>
    tpu.vector_store %arg6[%159, %c0_45, %c0_46], %162 {strides = array<i32>} : memref<8x8x32xf32, #tpu.memory_space<vmem>>, vector<1x8x32xf32>,
    %c0_i32_47 = arith.constant 0 : i32
    %163 = arith.cmpi eq, %arg1, %c0_i32_47 : i32
    %c7_i32_48 = arith.constant 7 : i32
    %164 = arith.cmpi eq, %c4_i32, %c7_i32_48 : i32
    %165 = arith.andi %163, %164 : i1
    %166 = arith.extui %165 : i1 to i32
    %c0_i32_49 = arith.constant 0 : i32
    %167 = arith.cmpi ne, %166, %c0_i32_49 : i32
    scf.if %167 {
      %c0_80 = arith.constant 0 : index
      %c0_81 = arith.constant 0 : index
      %265 = vector.load %arg7[%c0_80, %c0_81] : memref<8x32xf32, #tpu.memory_space<vmem>>, vector<8x32xf32>
      tpu.vector_store %arg7[%c0_80, %c0_81], %158 {strides = array<i32>} : memref<8x32xf32, #tpu.memory_space<vmem>>, vector<8x32xf32>,
    } else {
    }
    %c5_i32 = arith.constant 5 : i32
    %168 = arith.index_cast %c5_i32 : i32 to index
    %c0_50 = arith.constant 0 : index
    %c0_51 = arith.constant 0 : index
    %169 = vector.load %arg2[%168, %c0_50, %c0_51] : memref<8x8x96xf32, #tpu.memory_space<vmem>>, vector<1x8x96xf32>
    %170 = vector.shape_cast %169 : vector<1x8x96xf32> to vector<8x96xf32>
    %cst_52 = arith.constant dense<0.000000e+00> : vector<8x96xf32>
    %171 = tpu.matmul %158, %3, %cst_52 {dimension_numbers = #tpu.dot_dimension_numbers<[1], [0], [0], [1], [0, 0, 1, 1], [], []>} : vector<8x32xf32>, vector<32x96xf32>, vector<8x96xf32> -> vector<8x96xf32>
    %172 = vector.extract_strided_slice %170 {offsets = [0, 0], sizes = [8, 64], strides = [1, 1]} : vector<8x96xf32> to vector<8x64xf32>
    %173 = vector.extract_strided_slice %171 {offsets = [0, 0], sizes = [8, 64], strides = [1, 1]} : vector<8x96xf32> to vector<8x64xf32>
    %174 = arith.addf %172, %173 : vector<8x64xf32>
    %175 = arith.negf %174 : vector<8x64xf32>
    %176 = math.exp %175 : vector<8x64xf32>
    %cst_53 = arith.constant 1.000000e+00 : f32
    %177 = vector.broadcast %cst_53 : f32 to vector<8x64xf32>
    %178 = arith.addf %177, %176 : vector<8x64xf32>
    %179 = arith.divf %177, %178 : vector<8x64xf32>
    %180 = vector.extract_strided_slice %179 {offsets = [0, 0], sizes = [8, 32], strides = [1, 1]} : vector<8x64xf32> to vector<8x32xf32>
    %181 = vector.extract_strided_slice %179 {offsets = [0, 32], sizes = [8, 32], strides = [1, 1]} : vector<8x64xf32> to vector<8x32xf32>
    %182 = vector.extract_strided_slice %170 {offsets = [0, 64], sizes = [8, 32], strides = [1, 1]} : vector<8x96xf32> to vector<8x32xf32>
    %183 = vector.extract_strided_slice %171 {offsets = [0, 64], sizes = [8, 32], strides = [1, 1]} : vector<8x96xf32> to vector<8x32xf32>
    %184 = arith.addf %183, %6 : vector<8x32xf32>
    %185 = arith.mulf %180, %184 : vector<8x32xf32>
    %186 = arith.addf %182, %185 : vector<8x32xf32>
    %187 = math.tanh %186 : vector<8x32xf32>
    %188 = arith.subf %158, %187 : vector<8x32xf32>
    %189 = arith.mulf %181, %188 : vector<8x32xf32>
    %190 = arith.addf %187, %189 : vector<8x32xf32>
    %191 = arith.index_cast %c5_i32 : i32 to index
    %c0_54 = arith.constant 0 : index
    %c0_55 = arith.constant 0 : index
    %192 = vector.load %arg6[%191, %c0_54, %c0_55] : memref<8x8x32xf32, #tpu.memory_space<vmem>>, vector<1x8x32xf32>
    %193 = vector.shape_cast %192 : vector<1x8x32xf32> to vector<8x32xf32>
    %194 = vector.shape_cast %190 : vector<8x32xf32> to vector<1x8x32xf32>
    tpu.vector_store %arg6[%191, %c0_54, %c0_55], %194 {strides = array<i32>} : memref<8x8x32xf32, #tpu.memory_space<vmem>>, vector<1x8x32xf32>,
    %c0_i32_56 = arith.constant 0 : i32
    %195 = arith.cmpi eq, %arg1, %c0_i32_56 : i32
    %c7_i32_57 = arith.constant 7 : i32
    %196 = arith.cmpi eq, %c5_i32, %c7_i32_57 : i32
    %197 = arith.andi %195, %196 : i1
    %198 = arith.extui %197 : i1 to i32
    %c0_i32_58 = arith.constant 0 : i32
    %199 = arith.cmpi ne, %198, %c0_i32_58 : i32
    scf.if %199 {
      %c0_80 = arith.constant 0 : index
      %c0_81 = arith.constant 0 : index
      %265 = vector.load %arg7[%c0_80, %c0_81] : memref<8x32xf32, #tpu.memory_space<vmem>>, vector<8x32xf32>
      tpu.vector_store %arg7[%c0_80, %c0_81], %190 {strides = array<i32>} : memref<8x32xf32, #tpu.memory_space<vmem>>, vector<8x32xf32>,
    } else {
    }
    %c6_i32 = arith.constant 6 : i32
    %200 = arith.index_cast %c6_i32 : i32 to index
    %c0_59 = arith.constant 0 : index
    %c0_60 = arith.constant 0 : index
    %201 = vector.load %arg2[%200, %c0_59, %c0_60] : memref<8x8x96xf32, #tpu.memory_space<vmem>>, vector<1x8x96xf32>
    %202 = vector.shape_cast %201 : vector<1x8x96xf32> to vector<8x96xf32>
    %cst_61 = arith.constant dense<0.000000e+00> : vector<8x96xf32>
    %203 = tpu.matmul %190, %3, %cst_61 {dimension_numbers = #tpu.dot_dimension_numbers<[1], [0], [0], [1], [0, 0, 1, 1], [], []>} : vector<8x32xf32>, vector<32x96xf32>, vector<8x96xf32> -> vector<8x96xf32>
    %204 = vector.extract_strided_slice %202 {offsets = [0, 0], sizes = [8, 64], strides = [1, 1]} : vector<8x96xf32> to vector<8x64xf32>
    %205 = vector.extract_strided_slice %203 {offsets = [0, 0], sizes = [8, 64], strides = [1, 1]} : vector<8x96xf32> to vector<8x64xf32>
    %206 = arith.addf %204, %205 : vector<8x64xf32>
    %207 = arith.negf %206 : vector<8x64xf32>
    %208 = math.exp %207 : vector<8x64xf32>
    %cst_62 = arith.constant 1.000000e+00 : f32
    %209 = vector.broadcast %cst_62 : f32 to vector<8x64xf32>
    %210 = arith.addf %209, %208 : vector<8x64xf32>
    %211 = arith.divf %209, %210 : vector<8x64xf32>
    %212 = vector.extract_strided_slice %211 {offsets = [0, 0], sizes = [8, 32], strides = [1, 1]} : vector<8x64xf32> to vector<8x32xf32>
    %213 = vector.extract_strided_slice %211 {offsets = [0, 32], sizes = [8, 32], strides = [1, 1]} : vector<8x64xf32> to vector<8x32xf32>
    %214 = vector.extract_strided_slice %202 {offsets = [0, 64], sizes = [8, 32], strides = [1, 1]} : vector<8x96xf32> to vector<8x32xf32>
    %215 = vector.extract_strided_slice %203 {offsets = [0, 64], sizes = [8, 32], strides = [1, 1]} : vector<8x96xf32> to vector<8x32xf32>
    %216 = arith.addf %215, %6 : vector<8x32xf32>
    %217 = arith.mulf %212, %216 : vector<8x32xf32>
    %218 = arith.addf %214, %217 : vector<8x32xf32>
    %219 = math.tanh %218 : vector<8x32xf32>
    %220 = arith.subf %190, %219 : vector<8x32xf32>
    %221 = arith.mulf %213, %220 : vector<8x32xf32>
    %222 = arith.addf %219, %221 : vector<8x32xf32>
    %223 = arith.index_cast %c6_i32 : i32 to index
    %c0_63 = arith.constant 0 : index
    %c0_64 = arith.constant 0 : index
    %224 = vector.load %arg6[%223, %c0_63, %c0_64] : memref<8x8x32xf32, #tpu.memory_space<vmem>>, vector<1x8x32xf32>
    %225 = vector.shape_cast %224 : vector<1x8x32xf32> to vector<8x32xf32>
    %226 = vector.shape_cast %222 : vector<8x32xf32> to vector<1x8x32xf32>
    tpu.vector_store %arg6[%223, %c0_63, %c0_64], %226 {strides = array<i32>} : memref<8x8x32xf32, #tpu.memory_space<vmem>>, vector<1x8x32xf32>,
    %c0_i32_65 = arith.constant 0 : i32
    %227 = arith.cmpi eq, %arg1, %c0_i32_65 : i32
    %c7_i32_66 = arith.constant 7 : i32
    %228 = arith.cmpi eq, %c6_i32, %c7_i32_66 : i32
    %229 = arith.andi %227, %228 : i1
    %230 = arith.extui %229 : i1 to i32
    %c0_i32_67 = arith.constant 0 : i32
    %231 = arith.cmpi ne, %230, %c0_i32_67 : i32
    scf.if %231 {
      %c0_80 = arith.constant 0 : index
      %c0_81 = arith.constant 0 : index
      %265 = vector.load %arg7[%c0_80, %c0_81] : memref<8x32xf32, #tpu.memory_space<vmem>>, vector<8x32xf32>
      tpu.vector_store %arg7[%c0_80, %c0_81], %222 {strides = array<i32>} : memref<8x32xf32, #tpu.memory_space<vmem>>, vector<8x32xf32>,
    } else {
    }
    %c7_i32_68 = arith.constant 7 : i32
    %232 = arith.index_cast %c7_i32_68 : i32 to index
    %c0_69 = arith.constant 0 : index
    %c0_70 = arith.constant 0 : index
    %233 = vector.load %arg2[%232, %c0_69, %c0_70] : memref<8x8x96xf32, #tpu.memory_space<vmem>>, vector<1x8x96xf32>
    %234 = vector.shape_cast %233 : vector<1x8x96xf32> to vector<8x96xf32>
    %cst_71 = arith.constant dense<0.000000e+00> : vector<8x96xf32>
    %235 = tpu.matmul %222, %3, %cst_71 {dimension_numbers = #tpu.dot_dimension_numbers<[1], [0], [0], [1], [0, 0, 1, 1], [], []>} : vector<8x32xf32>, vector<32x96xf32>, vector<8x96xf32> -> vector<8x96xf32>
    %236 = vector.extract_strided_slice %234 {offsets = [0, 0], sizes = [8, 64], strides = [1, 1]} : vector<8x96xf32> to vector<8x64xf32>
    %237 = vector.extract_strided_slice %235 {offsets = [0, 0], sizes = [8, 64], strides = [1, 1]} : vector<8x96xf32> to vector<8x64xf32>
    %238 = arith.addf %236, %237 : vector<8x64xf32>
    %239 = arith.negf %238 : vector<8x64xf32>
    %240 = math.exp %239 : vector<8x64xf32>
    %cst_72 = arith.constant 1.000000e+00 : f32
    %241 = vector.broadcast %cst_72 : f32 to vector<8x64xf32>
    %242 = arith.addf %241, %240 : vector<8x64xf32>
    %243 = arith.divf %241, %242 : vector<8x64xf32>
    %244 = vector.extract_strided_slice %243 {offsets = [0, 0], sizes = [8, 32], strides = [1, 1]} : vector<8x64xf32> to vector<8x32xf32>
    %245 = vector.extract_strided_slice %243 {offsets = [0, 32], sizes = [8, 32], strides = [1, 1]} : vector<8x64xf32> to vector<8x32xf32>
    %246 = vector.extract_strided_slice %234 {offsets = [0, 64], sizes = [8, 32], strides = [1, 1]} : vector<8x96xf32> to vector<8x32xf32>
    %247 = vector.extract_strided_slice %235 {offsets = [0, 64], sizes = [8, 32], strides = [1, 1]} : vector<8x96xf32> to vector<8x32xf32>
    %248 = arith.addf %247, %6 : vector<8x32xf32>
    %249 = arith.mulf %244, %248 : vector<8x32xf32>
    %250 = arith.addf %246, %249 : vector<8x32xf32>
    %251 = math.tanh %250 : vector<8x32xf32>
    %252 = arith.subf %222, %251 : vector<8x32xf32>
    %253 = arith.mulf %245, %252 : vector<8x32xf32>
    %254 = arith.addf %251, %253 : vector<8x32xf32>
    %255 = arith.index_cast %c7_i32_68 : i32 to index
    %c0_73 = arith.constant 0 : index
    %c0_74 = arith.constant 0 : index
    %256 = vector.load %arg6[%255, %c0_73, %c0_74] : memref<8x8x32xf32, #tpu.memory_space<vmem>>, vector<1x8x32xf32>
    %257 = vector.shape_cast %256 : vector<1x8x32xf32> to vector<8x32xf32>
    %258 = vector.shape_cast %254 : vector<8x32xf32> to vector<1x8x32xf32>
    tpu.vector_store %arg6[%255, %c0_73, %c0_74], %258 {strides = array<i32>} : memref<8x8x32xf32, #tpu.memory_space<vmem>>, vector<1x8x32xf32>,
    %c0_i32_75 = arith.constant 0 : i32
    %259 = arith.cmpi eq, %arg1, %c0_i32_75 : i32
    %c7_i32_76 = arith.constant 7 : i32
    %260 = arith.cmpi eq, %c7_i32_68, %c7_i32_76 : i32
    %261 = arith.andi %259, %260 : i1
    %262 = arith.extui %261 : i1 to i32
    %c0_i32_77 = arith.constant 0 : i32
    %263 = arith.cmpi ne, %262, %c0_i32_77 : i32
    scf.if %263 {
      %c0_80 = arith.constant 0 : index
      %c0_81 = arith.constant 0 : index
      %265 = vector.load %arg7[%c0_80, %c0_81] : memref<8x32xf32, #tpu.memory_space<vmem>>, vector<8x32xf32>
      tpu.vector_store %arg7[%c0_80, %c0_81], %254 {strides = array<i32>} : memref<8x32xf32, #tpu.memory_space<vmem>>, vector<8x32xf32>,
    } else {
    }
    %c8_i32 = arith.constant 8 : i32
    %c0_78 = arith.constant 0 : index
    %c0_79 = arith.constant 0 : index
    %264 = vector.load %arg8[%c0_78, %c0_79] : memref<8x32xf32, #tpu.memory_space<vmem>>, vector<8x32xf32>
    tpu.vector_store %arg8[%c0_78, %c0_79], %254 {strides = array<i32>} : memref<8x32xf32, #tpu.memory_space<vmem>>, vector<8x32xf32>,
    return
  }
  func.func @transform_0(%arg0: i32, %arg1: i32) -> (i32, i32, i32) {
    %c0_i32 = arith.constant 0 : i32
    %c0_i32_0 = arith.constant 0 : i32
    return %arg1, %arg0, %c0_i32 : i32, i32, i32
  }
  func.func @transform_1(%arg0: i32, %arg1: i32) -> (i32, i32) {
    %c0_i32 = arith.constant 0 : i32
    %c0_i32_0 = arith.constant 0 : i32
    return %arg0, %c0_i32 : i32, i32
  }
  func.func @transform_2(%arg0: i32, %arg1: i32) -> (i32, i32) {
    %c0_i32 = arith.constant 0 : i32
    %c0_i32_0 = arith.constant 0 : i32
    %c0_i32_1 = arith.constant 0 : i32
    return %c0_i32, %c0_i32_0 : i32, i32
  }
  func.func @transform_3(%arg0: i32, %arg1: i32) -> (i32, i32) {
    %c0_i32 = arith.constant 0 : i32
    %c0_i32_0 = arith.constant 0 : i32
    %c0_i32_1 = arith.constant 0 : i32
    return %c0_i32, %c0_i32_0 : i32, i32
  }
  func.func @transform_4(%arg0: i32, %arg1: i32) -> (i32, i32, i32) {
    %c0_i32 = arith.constant 0 : i32
    %c0_i32_0 = arith.constant 0 : i32
    return %arg1, %arg0, %c0_i32 : i32, i32, i32
  }
  func.func @transform_5(%arg0: i32, %arg1: i32) -> (i32, i32) {
    %c0_i32 = arith.constant 0 : i32
    %c0_i32_0 = arith.constant 0 : i32
    return %arg0, %c0_i32 : i32, i32
  }
}

</mosaic_0001>

<bundles_post_ra>
// kernel: tpu_custom_call.1
= control target key start
LH: loop header
LB: loop body
LE: loop exit
PB: predicated region body
PF: predicated region fallthrough
CT: control target
= control target key end

     0   :  { %11 = vsyncpa [#allocation4], 0  ;;  %s1674_s0 = inlined_call_operand.hbm [shape: f32[8,8,96], index: 0, kind: input, shape index: {}]   ;;  %s1675_s1 = inlined_call_operand.hbm [shape: f32[8,32], index: 1, kind: input, shape index: {}]   ;;  %s1676_s2 = inlined_call_operand.hbm [shape: f32[32,96], index: 2, kind: input, shape index: {}]   ;;  %s1677_s3 = inlined_call_operand.hbm [shape: f32[1,32], index: 3, kind: input, shape index: {}]   ;;  %s1678_s4 = inlined_call_operand.hbm [shape: f32[8,8,32], index: 4, kind: output, shape index: {0}]   ;;  %s1679_s5 = inlined_call_operand.hbm [shape: f32[8,32], index: 5, kind: output, shape index: {1}]  }
   0x1   :  { %12 = vsyncpa [#allocation7], 0 }
   0x2   :  { %13 = vsyncpa [#allocation10], 0 }
   0x3   :  { %14 = vsyncpa [#allocation5], 0 }
   0x4   :  { %15 = vsyncpa [#allocation13], 0  ;;  %s1412_s18 = smov [#allocation6]   ;;  %s1413_s20 = smov [#allocation3]  }
   0x5   :  { %s34_s19 = sshll.u32 %s1412_s18, 4  ;;  %s21_s21 = sshll.u32 %s1413_s20, 4  ;;  %s35_s19 = int_to_ptr.vmem [resolvable:$true] %s34_s19  ;;  %s1456_s21 = int_to_ptr.vmem [resolvable:$true] %s21_s21 }
   0x6   :  { %s1270_s24 = scalar_lea.hbm %s1675_s1, 128 }
   0x7   :  { %p1271_p0 = scmp.ne.s32.totalorder %s1675_s1, %s1270_s24  ;;  %p1274_p1 = scmp.lt.u32.totalorder %s1270_s24, %s1675_s1 }
   0x9   :  { %p1276_p2 = pnand %p1274_p1, %p1271_p0 }
   0xb   :  { %1279 = shalt.err (!%p1276_p2)
}
   0xc   :  { %s1280_s29 = scalar_lea.vmem %s35_s19, 128  ;;  %p1285_p4 = scmp.lt.s32.totalorder %s35_s19, %s35_s19 }
   0xd   :  { %p1281_p3 = scmp.ne.s32.totalorder %s35_s19, %s1280_s29  ;;  %p1286_p5 = scmp.lt.s32.totalorder %s1280_s29, %s1280_s29 }
   0xf   :  { %p1287_p6 = por %p1286_p5, %p1285_p4 }
  0x11   :  { %p1288_p7 = pnand %p1287_p6, %p1281_p3 }
  0x13   :  { %1291 = shalt.err (!%p1288_p7)
}
  0x14   :  { %37 = dma.hbm_to_vmem [thread:$0]  %s1675_s1, 128, %s35_s19, [#allocation7]  }
  0x15   :  { %s1292_s9 = scalar_lea.hbm %s1674_s0, 1024 }
  0x16   :  { %p1293_p8 = scmp.ne.s32.totalorder %s1674_s0, %s1292_s9  ;;  %p1296_p9 = scmp.lt.u32.totalorder %s1292_s9, %s1674_s0 }
  0x18   :  { %p1298_p10 = pnand %p1296_p9, %p1293_p8 }
  0x1a   :  { %1301 = shalt.err (!%p1298_p10)
}
  0x1b   :  { %s1302_s14 = scalar_lea.vmem %s1456_s21, 1024  ;;  %p1307_p12 = scmp.lt.s32.totalorder %s1456_s21, %s1456_s21 }
  0x1c   :  { %p1303_p11 = scmp.ne.s32.totalorder %s1456_s21, %s1302_s14  ;;  %p1308_p13 = scmp.lt.s32.totalorder %s1302_s14, %s1302_s14 }
  0x1e   :  { %p1309_p0 = por %p1308_p13, %p1307_p12 }
  0x20   :  { %p1310_p1 = pnand %p1309_p0, %p1303_p11 }
  0x22   :  { %1313 = shalt.err (!%p1310_p1)
}
  0x23   :  { %s1414_s1 = smov 128   ;;  %s1415_s15 = smov 8  }
  0x24   :  { %27 = dma.hbm_to_vmem [thread:$0]  %s1674_s0, 1024, %s1456_s21, [#allocation4], %s1414_s1, %s1414_s1, %s1415_s15  }
  0x25   :  { %s1416_s18 = smov [#allocation8]   ;;  %s1417_s20 = smov [#allocation9]  }
  0x26   :  { %s43_s19 = sshll.u32 %s1416_s18, 4  ;;  %s56_s22 = sshll.u32 %s1417_s20, 4  ;;  %s44_s19 = int_to_ptr.vmem [resolvable:$true] %s43_s19  ;;  %s57_s22 = int_to_ptr.vmem [resolvable:$true] %s56_s22 }
  0x27   :  { %s1314_s25 = scalar_lea.hbm %s1676_s2, 512 }
  0x28   :  { %p1315_p2 = scmp.ne.s32.totalorder %s1676_s2, %s1314_s25  ;;  %p1318_p3 = scmp.lt.u32.totalorder %s1314_s25, %s1676_s2 }
  0x2a   :  { %p1320_p4 = pnand %p1318_p3, %p1315_p2 }
  0x2c   :  { %1323 = shalt.err (!%p1320_p4)
}
  0x2d   :  { %s1324_s0 = scalar_lea.vmem %s44_s19, 512  ;;  %p1329_p6 = scmp.lt.s32.totalorder %s44_s19, %s44_s19 }
  0x2e   :  { %p1325_p5 = scmp.ne.s32.totalorder %s44_s19, %s1324_s0  ;;  %p1330_p7 = scmp.lt.s32.totalorder %s1324_s0, %s1324_s0 }
  0x30   :  { %p1331_p8 = por %p1330_p7, %p1329_p6 }
  0x32   :  { %p1332_p9 = pnand %p1331_p8, %p1325_p5 }
  0x34   :  { %1335 = shalt.err (!%p1332_p9)
}
  0x35   :  { %49 = dma.hbm_to_vmem [thread:$0]  %s1676_s2, 512, %s44_s19, [#allocation7], %s1414_s1, %s1414_s1, %s1415_s15  }
  0x36   :  { %s1336_s8 = scalar_lea.hbm %s1677_s3, 16 }
  0x37   :  { %p1337_p10 = scmp.ne.s32.totalorder %s1677_s3, %s1336_s8  ;;  %p1340_p11 = scmp.lt.u32.totalorder %s1336_s8, %s1677_s3 }
  0x39   :  { %p1342_p12 = pnand %p1340_p11, %p1337_p10 }
  0x3b   :  { %1345 = shalt.err (!%p1342_p12)
}
  0x3c   :  { %s1346_s13 = scalar_lea.vmem %s57_s22, 16  ;;  %s1350_s14 = scalar_lea.vmem %s57_s22, 32 }
  0x3d   :  { %p1347_p13 = scmp.ne.s32.totalorder %s57_s22, %s1346_s13  ;;  %p1351_p0 = scmp.lt.s32.totalorder %s57_s22, %s57_s22 }
  0x3e   :  { %p1352_p1 = scmp.lt.s32.totalorder %s1350_s14, %s1346_s13 }
  0x40   :  { %p1353_p2 = por %p1352_p1, %p1351_p0 }
  0x42   :  { %p1354_p3 = pnand %p1353_p2, %p1347_p13 }
  0x44   :  { %1357 = shalt.err (!%p1354_p3)
}
  0x45   :  { %59 = dma.hbm_to_vmem [thread:$0]  %s1677_s3, 16, %s57_s22, [#allocation10]  }
  0x46   :  { %1402 = dma.done.wait [#allocation4], 1024  }
  0x47   :  { %1403 = vsyncadd [#allocation4], 4294966272 }
  0x48   :  { %1404 = dma.done.wait [#allocation7], 640  }
  0x49   :  { %1405 = vsyncadd [#allocation7], 4294966656 }
  0x4a   :  { %1406 = dma.done.wait [#allocation10], 16  }
  0x4b   :  { %1407 = vsyncadd [#allocation10], 4294967280  ;;  %v1418_v0 = vmov 0.0|0.0   ;;  %vm1419_vm0 = vmmov 0   ;;  %v1420_v1 = vmov 0.0   ;;  %vm77_vm1 = vcmask 261120  }
  0x4c   :  { %1160 = vmatprep.subr.bf16.mxu0 %v1418_v0  ;;  %1080 = vmatprep.mubr.msk.f32.mxu0 %vm1419_vm0, %v1420_v1  ;;  %v79_v2 = vld [vmem:[#allocation8] sm:$0xff]  ;;  %v80_v3 = vld [vmem:[#allocation8 + $0x8] sm:$0xff]  ;;  %v81_v4 = vld [vmem:[#allocation8 + $0x10] sm:$0xff]  ;;  %s1421_s3 = smov 64   ;;  %s1422_s17 = smov 32  }
  0x4d   :  { %1166 = vmatprep.subr.bf16.mxu1 %v1418_v0  ;;  %1091 = vmatprep.mubr.msk.f32.mxu1 %vm1419_vm0, %v1420_v1  ;;  %v1523_v5 = vpack.c.bf16 %v80_v3, %v79_v2  ;;  %v82_v6 = vld [vmem:[#allocation8 + $0x18] sm:$0xff]  ;;  %v1015_v8 = vld [vmem:[#allocation9] ss:$0 sm:$0xff]  ;;  %s1423_s18 = smov 96   ;;  %v318_v56 = vld [vmem:[#allocation3 + $0x10] sm:$0xff]  ;;  %s1424_s19 = smov [#allocation11]  }
  0x4e   :  { %v76_v7 = vld [vmem:[#allocation6] sm:$0xff]  ;;  %172 = vrot.lane.b32.xlu0 %v1015_v8, %s1421_s3  ;;  %v1528_v9 = vpack.c.bf16 %v82_v6, %v81_v4  ;;  %v208_v36 = vld [vmem:[#allocation3 + $0x8] sm:$0xff]  ;;  %s987_s20 = sshll.u32 %s1424_s19, 4  ;;  %s1425_s22 = smov [#allocation12]   ;;  %s988_s20 = int_to_ptr.vmem [resolvable:$true] %s987_s20 }
  0x4f   :  { %78 = vst.msk [vmem:[#allocation2] sm:$0xff] %vm77_vm1, %v76_v7  ;;  %1162 = vmatpush3.bf16.msra.mxu0 %v1523_v5  ;;  %1168 = vmatpush3.bf16.msra.mxu1 %v1523_v5  ;;  %v90_v15 = vld [vmem:[#allocation3] sm:$0xff]  ;;  %s1000_s23 = sshll.u32 %s1425_s22, 4  ;;  %s1358_s24 = scalar_lea.vmem %s988_s20, 1024  ;;  %s1637_s23 = int_to_ptr.vmem [resolvable:$true] %s1000_s23 }
  0x50   :  { %1163 = vmatprep.subr.bf16.mxu0 %v1418_v0  ;;  %1169 = vmatprep.subr.bf16.mxu1 %v1418_v0  ;;  %p1359_p4 = scmp.ne.s32.totalorder %s988_s20, %s1358_s24  ;;  %p1363_p5 = scmp.lt.s32.totalorder %s988_s20, %s988_s20 }
  0x51   :  { %p1364_p6 = scmp.lt.s32.totalorder %s1358_s24, %s1358_s24 }
  0x53   :  { %1165 = vmatpush3.bf16.msra.mxu0 %v1528_v9  ;;  %1171 = vmatpush3.bf16.msra.mxu1 %v1528_v9  ;;  %p1365_p7 = por %p1364_p6, %p1363_p5 }
  0x54   :  { %1172 = vmatprep.subr.bf16.mxu0 %v1418_v0  ;;  %1178 = vmatprep.subr.bf16.mxu1 %v1418_v0 }
  0x55   :  { %p1366_p8 = pnand %p1365_p7, %p1359_p4 }
  0x56   :  { %v89_v10 = vld [vmem:[#allocation2] sm:$0xff] }
  0x57   :  { %1081 = vmatmul.mubr.msk.f32.vlgmr.msra.gmra.mrb[0].mxu0 %vm77_vm1, %v89_v10 }
  0x58   :  { %1174 = vmatpush3.bf16.msra.mxu0 %v1523_v5  ;;  %1102 = vmatprep.mubr.msk.f32.mxu0 %vm1419_vm0, %v1420_v1 }
  0x59   :  { %1175 = vmatprep.subr.bf16.mxu0 %v1418_v0 }
  0x5c   :  { %1177 = vmatpush3.bf16.msra.mxu0 %v1528_v9 }
  0x5d   :  { %1184 = vmatprep.subr.bf16.mxu0 %v1418_v0 }
  0xc0   :  { %v1544_v11 = vpop.permute.xlu0 %172 }
 0x12a   :  { %v161_v12 = vpop.f32.mrb[0].mxu0 }
 0x12b   :  { %v175_v13 = vadd.f32 %v1544_v11, %v161_v12  ;;  %v1082_v14 = vpop.f32.mrb[1].mxu0  ;;  %v165_v16 = vadd.f32 %v161_v12, %v90_v15 }
 0x12d   :  { %177 = vrot.lane.b32.xlu0 %v175_v13, %s1421_s3  ;;  %v1017_v17 = vmul.f32 -1.442695, %v165_v16 }
 0x12f   :  { %1222 = vpow2.f32 %v1017_v17  ;;  %v428_v17 = vld [vmem:[#allocation3 + $0x18] sm:$0xff] }
 0x139   :  { %v1223_v18 = vpop.eup %1222 }
 0x13a   :  { %v169_v19 = vadd.f32 1.0, %v1223_v18 }
 0x13c   :  { %1224 = vrcp.f32 %v169_v19 }
 0x146   :  { %v1225_v20 = vpop.eup %1224 }
 0x19f   :  { %v178_v21 = vpop.permute.xlu0 %177 }
 0x1a0   :  { %v180_v22 = vmul.f32 %v1225_v20, %v178_v21 }
 0x1a2   :  { %182 = vrot.lane.b32.xlu1 %v180_v22, %s1421_s3 }
 0x214   :  { %v183_v23 = vpop.permute.xlu1 %182 }
 0x215   :  { %v185_v24 = vadd.f32 %v183_v23, %v90_v15 }
 0x217   :  { %1226 = vtanh.f32 %v185_v24 }
 0x221   :  { %v1227_v25 = vpop.eup %1226 }
 0x222   :  { %188 = vrot.lane.b32.xlu1 %v1227_v25, %s1421_s3 }
 0x294   :  { %v189_v26 = vpop.permute.xlu1 %188 }
 0x295   :  { %v191_v27 = vsub.f32 %v89_v10, %v189_v26 }
 0x297   :  { %193 = vrot.lane.b32.xlu0 %v191_v27, %s1422_s17 }
 0x309   :  { %v194_v28 = vpop.permute.xlu0 %193 }
 0x30a   :  { %v196_v29 = vmul.f32 %v1225_v20, %v194_v28 }
 0x30c   :  { %198 = vrot.lane.b32.xlu1 %v196_v29, %s1422_s17 }
 0x37e   :  { %v199_v30 = vpop.permute.xlu1 %198 }
 0x37f   :  { %v201_v31 = vadd.f32 %v1227_v25, %v199_v30 }
 0x381   :  { %203 = vrot.lane.b32.xlu0 %v201_v31, %s1421_s3 }
 0x3f3   :  { %v204_v32 = vpop.permute.xlu0 %203 }
 0x3f4   :  { %206 = vst.msk [vmem:[#allocation11] sm:$0xff] %vm77_vm1, %v204_v32  ;;  %1092 = vmatmul.mubr.msk.f32.vlgmr.msra.gmra.mrb[0].mxu1 %vm77_vm1, %v204_v32 }
 0x3f5   :  { %1180 = vmatpush3.bf16.msra.mxu1 %v1523_v5  ;;  %1113 = vmatprep.mubr.msk.f32.mxu1 %vm1419_vm0, %v1420_v1 }
 0x3f6   :  { %1181 = vmatprep.subr.bf16.mxu1 %v1418_v0 }
 0x3f9   :  { %1183 = vmatpush3.bf16.msra.mxu1 %v1528_v9 }
 0x3fa   :  { %1190 = vmatprep.subr.bf16.mxu1 %v1418_v0 }
 0x4c7   :  { %v277_v33 = vpop.f32.mrb[0].mxu1 }
 0x4c8   :  { %v288_v34 = vadd.f32 %v277_v33, %v1544_v11  ;;  %v1093_v35 = vpop.f32.mrb[1].mxu1  ;;  %v281_v37 = vadd.f32 %v277_v33, %v208_v36 }
 0x4ca   :  { %290 = vrot.lane.b32.xlu1 %v288_v34, %s1421_s3  ;;  %v1019_v38 = vmul.f32 -1.442695, %v281_v37  ;;  %v538_v37 = vld [vmem:[#allocation3 + $0x20] sm:$0xff] }
 0x4cc   :  { %1228 = vpow2.f32 %v1019_v38 }
 0x4d6   :  { %v1229_v39 = vpop.eup %1228 }
 0x4d7   :  { %v285_v40 = vadd.f32 1.0, %v1229_v39 }
 0x4d9   :  { %1230 = vrcp.f32 %v285_v40 }
 0x4e3   :  { %v1231_v41 = vpop.eup %1230 }
 0x53c   :  { %v291_v42 = vpop.permute.xlu1 %290 }
 0x53d   :  { %v293_v43 = vmul.f32 %v1231_v41, %v291_v42 }
 0x53f   :  { %295 = vrot.lane.b32.xlu0 %v293_v43, %s1421_s3 }
 0x5b1   :  { %v296_v44 = vpop.permute.xlu0 %295 }
 0x5b2   :  { %v298_v45 = vadd.f32 %v296_v44, %v208_v36 }
 0x5b4   :  { %1232 = vtanh.f32 %v298_v45 }
 0x5be   :  { %v1233_v46 = vpop.eup %1232 }
 0x5bf   :  { %v300_v47 = vsub.f32 %v201_v31, %v1233_v46 }
 0x5c1   :  { %302 = vrot.lane.b32.xlu1 %v300_v47, %s1423_s18 }
 0x633   :  { %v303_v48 = vpop.permute.xlu1 %302 }
 0x634   :  { %v305_v49 = vmul.f32 %v1231_v41, %v303_v48 }
 0x636   :  { %307 = vrot.lane.b32.xlu0 %v305_v49, %s1422_s17 }
 0x6a8   :  { %v308_v50 = vpop.permute.xlu0 %307 }
 0x6a9   :  { %v310_v51 = vadd.f32 %v1233_v46, %v308_v50 }
 0x6ab   :  { %312 = vrot.lane.b32.xlu1 %v310_v51, %s1421_s3 }
 0x71d   :  { %v313_v52 = vpop.permute.xlu1 %312 }
 0x71e   :  { %316 = vst.msk [vmem:[#allocation11 + $0x8] sm:$0xff] %vm77_vm1, %v313_v52  ;;  %1103 = vmatmul.mubr.msk.f32.vlgmr.msra.gmra.mrb[2].mxu0 %vm77_vm1, %v313_v52 }
 0x71f   :  { %1186 = vmatpush3.bf16.msra.mxu0 %v1523_v5  ;;  %1124 = vmatprep.mubr.msk.f32.mxu0 %vm1419_vm0, %v1420_v1 }
 0x720   :  { %1187 = vmatprep.subr.bf16.mxu0 %v1418_v0 }
 0x723   :  { %1189 = vmatpush3.bf16.msra.mxu0 %v1528_v9 }
 0x724   :  { %1196 = vmatprep.subr.bf16.mxu0 %v1418_v0 }
 0x7f1   :  { %v387_v53 = vpop.f32.mrb[2].mxu0 }
 0x7f2   :  { %v398_v54 = vadd.f32 %v387_v53, %v1544_v11  ;;  %v1104_v55 = vpop.f32.mrb[3].mxu0  ;;  %v391_v57 = vadd.f32 %v387_v53, %v318_v56 }
 0x7f4   :  { %400 = vrot.lane.b32.xlu0 %v398_v54, %s1421_s3  ;;  %v1021_v58 = vmul.f32 -1.442695, %v391_v57  ;;  %v648_v57 = vld [vmem:[#allocation3 + $0x28] sm:$0xff] }
 0x7f6   :  { %1234 = vpow2.f32 %v1021_v58 }
 0x800   :  { %v1235_v59 = vpop.eup %1234 }
 0x801   :  { %v395_v60 = vadd.f32 1.0, %v1235_v59 }
 0x803   :  { %1236 = vrcp.f32 %v395_v60 }
 0x80d   :  { %v1237_v61 = vpop.eup %1236 }
 0x866   :  { %v401_v62 = vpop.permute.xlu0 %400 }
 0x867   :  { %v403_v63 = vmul.f32 %v1237_v61, %v401_v62 }
 0x869   :  { %405 = vrot.lane.b32.xlu1 %v403_v63, %s1421_s3 }
 0x8db   :  { %v406_v2 = vpop.permute.xlu1 %405 }
 0x8dc   :  { %v408_v3 = vadd.f32 %v406_v2, %v318_v56 }
 0x8de   :  { %1238 = vtanh.f32 %v408_v3 }
 0x8e8   :  { %v1239_v4 = vpop.eup %1238 }
 0x8e9   :  { %v410_v6 = vsub.f32 %v310_v51, %v1239_v4 }
 0x8eb   :  { %412 = vrot.lane.b32.xlu0 %v410_v6, %s1423_s18 }
 0x95d   :  { %v413_v7 = vpop.permute.xlu0 %412 }
 0x95e   :  { %v415_v8 = vmul.f32 %v1237_v61, %v413_v7 }
 0x960   :  { %417 = vrot.lane.b32.xlu1 %v415_v8, %s1422_s17 }
 0x9d2   :  { %v418_v10 = vpop.permute.xlu1 %417 }
 0x9d3   :  { %v420_v12 = vadd.f32 %v1239_v4, %v418_v10 }
 0x9d5   :  { %422 = vrot.lane.b32.xlu0 %v420_v12, %s1421_s3 }
 0xa47   :  { %v423_v13 = vpop.permute.xlu0 %422 }
 0xa48   :  { %426 = vst.msk [vmem:[#allocation11 + $0x10] sm:$0xff] %vm77_vm1, %v423_v13  ;;  %1114 = vmatmul.mubr.msk.f32.vlgmr.msra.gmra.mrb[2].mxu1 %vm77_vm1, %v423_v13 }
 0xa49   :  { %1192 = vmatpush3.bf16.msra.mxu1 %v1523_v5  ;;  %1135 = vmatprep.mubr.msk.f32.mxu1 %vm1419_vm0, %v1420_v1 }
 0xa4a   :  { %1193 = vmatprep.subr.bf16.mxu1 %v1418_v0 }
 0xa4d   :  { %1195 = vmatpush3.bf16.msra.mxu1 %v1528_v9 }
 0xa4e   :  { %1202 = vmatprep.subr.bf16.mxu1 %v1418_v0 }
 0xb1b   :  { %v497_v14 = vpop.f32.mrb[2].mxu1 }
 0xb1c   :  { %v508_v15 = vadd.f32 %v497_v14, %v1544_v11  ;;  %v1115_v16 = vpop.f32.mrb[3].mxu1  ;;  %v501_v18 = vadd.f32 %v497_v14, %v428_v17  ;;  %v758_v14 = vld [vmem:[#allocation3 + $0x30] sm:$0xff] }
 0xb1e   :  { %510 = vrot.lane.b32.xlu1 %v508_v15, %s1421_s3  ;;  %v1023_v19 = vmul.f32 -1.442695, %v501_v18 }
 0xb20   :  { %1240 = vpow2.f32 %v1023_v19 }
 0xb2a   :  { %v1241_v20 = vpop.eup %1240 }
 0xb2b   :  { %v505_v21 = vadd.f32 1.0, %v1241_v20 }
 0xb2d   :  { %1242 = vrcp.f32 %v505_v21 }
 0xb37   :  { %v1243_v22 = vpop.eup %1242 }
 0xb90   :  { %v511_v23 = vpop.permute.xlu1 %510 }
 0xb91   :  { %v513_v24 = vmul.f32 %v1243_v22, %v511_v23 }
 0xb93   :  { %515 = vrot.lane.b32.xlu0 %v513_v24, %s1421_s3 }
 0xc05   :  { %v516_v25 = vpop.permute.xlu0 %515 }
 0xc06   :  { %v518_v26 = vadd.f32 %v516_v25, %v428_v17 }
 0xc08   :  { %1244 = vtanh.f32 %v518_v26 }
 0xc12   :  { %v1245_v27 = vpop.eup %1244 }
 0xc13   :  { %v520_v28 = vsub.f32 %v420_v12, %v1245_v27 }
 0xc15   :  { %522 = vrot.lane.b32.xlu1 %v520_v28, %s1423_s18 }
 0xc87   :  { %v523_v29 = vpop.permute.xlu1 %522 }
 0xc88   :  { %v525_v30 = vmul.f32 %v1243_v22, %v523_v29 }
 0xc8a   :  { %527 = vrot.lane.b32.xlu0 %v525_v30, %s1422_s17 }
 0xcfc   :  { %v528_v31 = vpop.permute.xlu0 %527 }
 0xcfd   :  { %v530_v32 = vadd.f32 %v1245_v27, %v528_v31 }
 0xcff   :  { %532 = vrot.lane.b32.xlu1 %v530_v32, %s1421_s3 }
 0xd71   :  { %v533_v33 = vpop.permute.xlu1 %532 }
 0xd72   :  { %536 = vst.msk [vmem:[#allocation11 + $0x18] sm:$0xff] %vm77_vm1, %v533_v33  ;;  %1125 = vmatmul.mubr.msk.f32.vlgmr.msra.gmra.mrb[4].mxu0 %vm77_vm1, %v533_v33 }
 0xd73   :  { %1198 = vmatpush3.bf16.msra.mxu0 %v1523_v5  ;;  %1146 = vmatprep.mubr.msk.f32.mxu0 %vm1419_vm0, %v1420_v1 }
 0xd74   :  { %1199 = vmatprep.subr.bf16.mxu0 %v1418_v0 }
 0xd77   :  { %1201 = vmatpush3.bf16.msra.mxu0 %v1528_v9 }
 0xe45   :  { %v607_v34 = vpop.f32.mrb[4].mxu0 }
 0xe46   :  { %v618_v35 = vadd.f32 %v607_v34, %v1544_v11  ;;  %v1126_v36 = vpop.f32.mrb[5].mxu0  ;;  %v611_v38 = vadd.f32 %v607_v34, %v538_v37  ;;  %v868_v34 = vld [vmem:[#allocation3 + $0x38] sm:$0xff] }
 0xe48   :  { %620 = vrot.lane.b32.xlu0 %v618_v35, %s1421_s3  ;;  %v1025_v39 = vmul.f32 -1.442695, %v611_v38 }
 0xe4a   :  { %1246 = vpow2.f32 %v1025_v39 }
 0xe54   :  { %v1247_v40 = vpop.eup %1246 }
 0xe55   :  { %v615_v41 = vadd.f32 1.0, %v1247_v40 }
 0xe57   :  { %1248 = vrcp.f32 %v615_v41 }
 0xe61   :  { %v1249_v42 = vpop.eup %1248 }
 0xeba   :  { %v621_v43 = vpop.permute.xlu0 %620 }
 0xebb   :  { %v623_v44 = vmul.f32 %v1249_v42, %v621_v43 }
 0xebd   :  { %625 = vrot.lane.b32.xlu1 %v623_v44, %s1421_s3 }
 0xf2f   :  { %v626_v45 = vpop.permute.xlu1 %625 }
 0xf30   :  { %v628_v46 = vadd.f32 %v626_v45, %v538_v37 }
 0xf32   :  { %1250 = vtanh.f32 %v628_v46 }
 0xf3c   :  { %v1251_v47 = vpop.eup %1250 }
 0xf3d   :  { %v630_v48 = vsub.f32 %v530_v32, %v1251_v47 }
 0xf3f   :  { %632 = vrot.lane.b32.xlu0 %v630_v48, %s1423_s18 }
 0xfb1   :  { %v633_v49 = vpop.permute.xlu0 %632 }
 0xfb2   :  { %v635_v50 = vmul.f32 %v1249_v42, %v633_v49 }
 0xfb4   :  { %637 = vrot.lane.b32.xlu1 %v635_v50, %s1422_s17 }
0x1026   :  { %v638_v51 = vpop.permute.xlu1 %637 }
0x1027   :  { %v640_v52 = vadd.f32 %v1251_v47, %v638_v51 }
0x1029   :  { %642 = vrot.lane.b32.xlu0 %v640_v52, %s1421_s3 }
0x109b   :  { %v643_v53 = vpop.permute.xlu0 %642 }
0x109c   :  { %646 = vst.msk [vmem:[#allocation11 + $0x20] sm:$0xff] %vm77_vm1, %v643_v53  ;;  %1136 = vmatmul.mubr.msk.f32.vlgmr.msra.gmra.mrb[4].mxu1 %vm77_vm1, %v643_v53 }
0x109d   :  { %1204 = vmatpush3.bf16.msra.mxu1 %v1523_v5  ;;  %1157 = vmatprep.mubr.msk.f32.mxu1 %vm1419_vm0, %v1420_v1 }
0x109e   :  { %1205 = vmatprep.subr.bf16.mxu1 %v1418_v0 }
0x10a1   :  { %1207 = vmatpush3.bf16.msra.mxu1 %v1528_v9 }
0x116f   :  { %v717_v54 = vpop.f32.mrb[4].mxu1 }
0x1170   :  { %v728_v55 = vadd.f32 %v717_v54, %v1544_v11  ;;  %v1137_v56 = vpop.f32.mrb[5].mxu1  ;;  %v721_v58 = vadd.f32 %v717_v54, %v648_v57 }
0x1172   :  { %730 = vrot.lane.b32.xlu1 %v728_v55, %s1421_s3  ;;  %v1027_v59 = vmul.f32 -1.442695, %v721_v58 }
0x1174   :  { %1252 = vpow2.f32 %v1027_v59 }
0x117e   :  { %v1253_v60 = vpop.eup %1252 }
0x117f   :  { %v725_v61 = vadd.f32 1.0, %v1253_v60 }
0x1181   :  { %1254 = vrcp.f32 %v725_v61 }
0x118b   :  { %v1255_v5 = vpop.eup %1254 }
0x11e4   :  { %v731_v62 = vpop.permute.xlu1 %730 }
0x11e5   :  { %v733_v1 = vmul.f32 %v1255_v5, %v731_v62 }
0x11e7   :  { %735 = vrot.lane.b32.xlu0 %v733_v1, %s1421_s3 }
0x1259   :  { %v736_v0 = vpop.permute.xlu0 %735 }
0x125a   :  { %v738_v9 = vadd.f32 %v736_v0, %v648_v57 }
0x125c   :  { %1256 = vtanh.f32 %v738_v9 }
0x1266   :  { %v1257_v63 = vpop.eup %1256 }
0x1267   :  { %v740_v2 = vsub.f32 %v640_v52, %v1257_v63 }
0x1269   :  { %742 = vrot.lane.b32.xlu1 %v740_v2, %s1423_s18 }
0x12db   :  { %v743_v3 = vpop.permute.xlu1 %742 }
0x12dc   :  { %v745_v4 = vmul.f32 %v1255_v5, %v743_v3 }
0x12de   :  { %747 = vrot.lane.b32.xlu0 %v745_v4, %s1422_s17 }
0x1350   :  { %v748_v6 = vpop.permute.xlu0 %747 }
0x1351   :  { %v750_v7 = vadd.f32 %v1257_v63, %v748_v6 }
0x1353   :  { %752 = vrot.lane.b32.xlu1 %v750_v7, %s1421_s3 }
0x13c5   :  { %v753_v8 = vpop.permute.xlu1 %752 }
0x13c6   :  { %756 = vst.msk [vmem:[#allocation11 + $0x28] sm:$0xff] %vm77_vm1, %v753_v8  ;;  %1147 = vmatmul.mubr.msk.f32.vlgmr.msra.gmra.mrb[6].mxu0 %vm77_vm1, %v753_v8 }
0x1499   :  { %v827_v10 = vpop.f32.mrb[6].mxu0 }
0x149a   :  { %v838_v12 = vadd.f32 %v827_v10, %v1544_v11  ;;  %v1148_v13 = vpop.f32.mrb[7].mxu0  ;;  %v831_v15 = vadd.f32 %v827_v10, %v758_v14 }
0x149c   :  { %840 = vrot.lane.b32.xlu0 %v838_v12, %s1421_s3  ;;  %v1029_v16 = vmul.f32 -1.442695, %v831_v15 }
0x149e   :  { %1258 = vpow2.f32 %v1029_v16 }
0x14a8   :  { %v1259_v17 = vpop.eup %1258 }
0x14a9   :  { %v835_v18 = vadd.f32 1.0, %v1259_v17 }
0x14ab   :  { %1260 = vrcp.f32 %v835_v18 }
0x14b5   :  { %v1261_v19 = vpop.eup %1260 }
0x150e   :  { %v841_v20 = vpop.permute.xlu0 %840 }
0x150f   :  { %v843_v21 = vmul.f32 %v1261_v19, %v841_v20 }
0x1511   :  { %845 = vrot.lane.b32.xlu1 %v843_v21, %s1421_s3 }
0x1583   :  { %v846_v22 = vpop.permute.xlu1 %845 }
0x1584   :  { %v848_v23 = vadd.f32 %v846_v22, %v758_v14 }
0x1586   :  { %1262 = vtanh.f32 %v848_v23 }
0x1590   :  { %v1263_v24 = vpop.eup %1262 }
0x1591   :  { %v850_v25 = vsub.f32 %v750_v7, %v1263_v24 }
0x1593   :  { %852 = vrot.lane.b32.xlu0 %v850_v25, %s1423_s18 }
0x1605   :  { %v853_v26 = vpop.permute.xlu0 %852 }
0x1606   :  { %v855_v27 = vmul.f32 %v1261_v19, %v853_v26 }
0x1608   :  { %857 = vrot.lane.b32.xlu1 %v855_v27, %s1422_s17 }
0x167a   :  { %v858_v28 = vpop.permute.xlu1 %857 }
0x167b   :  { %v860_v29 = vadd.f32 %v1263_v24, %v858_v28 }
0x167d   :  { %862 = vrot.lane.b32.xlu0 %v860_v29, %s1421_s3 }
0x16ef   :  { %v863_v30 = vpop.permute.xlu0 %862 }
0x16f0   :  { %866 = vst.msk [vmem:[#allocation11 + $0x30] sm:$0xff] %vm77_vm1, %v863_v30  ;;  %1158 = vmatmul.mubr.msk.f32.vlgmr.msra.gmra.mrb[6].mxu1 %vm77_vm1, %v863_v30 }
0x17c3   :  { %v937_v31 = vpop.f32.mrb[6].mxu1 }
0x17c4   :  { %v948_v32 = vadd.f32 %v937_v31, %v1544_v11  ;;  %v1159_v33 = vpop.f32.mrb[7].mxu1  ;;  %v941_v35 = vadd.f32 %v937_v31, %v868_v34 }
0x17c6   :  { %950 = vrot.lane.b32.xlu1 %v948_v32, %s1421_s3  ;;  %v1031_v36 = vmul.f32 -1.442695, %v941_v35 }
0x17c8   :  { %1264 = vpow2.f32 %v1031_v36 }
0x17d2   :  { %v1265_v37 = vpop.eup %1264 }
0x17d3   :  { %v945_v38 = vadd.f32 1.0, %v1265_v37 }
0x17d5   :  { %1266 = vrcp.f32 %v945_v38 }
0x17df   :  { %v1267_v39 = vpop.eup %1266 }
0x1838   :  { %v951_v40 = vpop.permute.xlu1 %950 }
0x1839   :  { %v953_v41 = vmul.f32 %v1267_v39, %v951_v40 }
0x183b   :  { %955 = vrot.lane.b32.xlu0 %v953_v41, %s1421_s3 }
0x18ad   :  { %v956_v42 = vpop.permute.xlu0 %955 }
0x18ae   :  { %v958_v43 = vadd.f32 %v956_v42, %v868_v34 }
0x18b0   :  { %1268 = vtanh.f32 %v958_v43 }
0x18ba   :  { %v1269_v44 = vpop.eup %1268 }
0x18bb   :  { %v960_v11 = vsub.f32 %v860_v29, %v1269_v44 }
0x18bd   :  { %962 = vrot.lane.b32.xlu1 %v960_v11, %s1423_s18 }
0x192f   :  { %v963_v45 = vpop.permute.xlu1 %962 }
0x1930   :  { %v965_v46 = vmul.f32 %v1267_v39, %v963_v45 }
0x1932   :  { %967 = vrot.lane.b32.xlu0 %v965_v46, %s1422_s17 }
0x19a4   :  { %v968_v47 = vpop.permute.xlu0 %967 }
0x19a5   :  { %v970_v48 = vadd.f32 %v1269_v44, %v968_v47 }
0x19a7   :  { %972 = vrot.lane.b32.xlu1 %v970_v48, %s1421_s3 }
0x1a19   :  { %v973_v49 = vpop.permute.xlu1 %972 }
0x1a1a   :  { %976 = vst.msk [vmem:[#allocation11 + $0x38] sm:$0xff] %vm77_vm1, %v973_v49  ;;  %981 = vst.msk [vmem:[#allocation2] sm:$0xff] %vm77_vm1, %v973_v49 }
0x1a1b   :  { %980 = vst.msk [vmem:[#allocation12] sm:$0xff] %vm77_vm1, %v973_v49 }
0x1a1c   :  { %1369 = shalt.err (!%p1366_p8)
}
0x1a1d   :  { %s1370_s27 = scalar_lea.hbm %s1678_s4, 1024 }
0x1a1e   :  { %p1371_p9 = scmp.ne.s32.totalorder %s1678_s4, %s1370_s27  ;;  %p1374_p10 = scmp.lt.u32.totalorder %s1370_s27, %s1678_s4 }
0x1a20   :  { %p1376_p11 = pnand %p1374_p10, %p1371_p9 }
0x1a22   :  { %1379 = shalt.err (!%p1376_p11)
}
0x1a23   :  { %993 = dma.vmem_to_hbm [thread:$0]  %s988_s20, 1024, %s1678_s4, [#allocation5], %s1414_s1, %s1414_s1, %s1415_s15  }
0x1a24   :  { %s1380_s7 = scalar_lea.vmem %s1637_s23, 128  ;;  %p1385_p13 = scmp.lt.s32.totalorder %s1637_s23, %s1637_s23 }
0x1a25   :  { %p1381_p12 = scmp.ne.s32.totalorder %s1637_s23, %s1380_s7  ;;  %p1386_p0 = scmp.lt.s32.totalorder %s1380_s7, %s1380_s7 }
0x1a27   :  { %p1387_p1 = por %p1386_p0, %p1385_p13 }
0x1a29   :  { %p1388_p2 = pnand %p1387_p1, %p1381_p12 }
0x1a2b   :  { %1391 = shalt.err (!%p1388_p2)
}
0x1a2c   :  { %s1392_s10 = scalar_lea.hbm %s1679_s5, 128 }
0x1a2d   :  { %p1393_p3 = scmp.ne.s32.totalorder %s1679_s5, %s1392_s10  ;;  %p1396_p4 = scmp.lt.u32.totalorder %s1392_s10, %s1679_s5 }
0x1a2f   :  { %p1398_p5 = pnand %p1396_p4, %p1393_p3 }
0x1a31   :  { %1401 = shalt.err (!%p1398_p5)
}
0x1a32   :  { %1003 = dma.vmem_to_hbm [thread:$0]  %s1637_s23, 128, %s1679_s5, [#allocation13]  }
0x1a33   :  { %1408 = dma.done.wait [#allocation5], 1024  }
0x1a34   :  { %1409 = vsyncadd [#allocation5], 4294966272 }
0x1a35   :  { %1410 = dma.done.wait [#allocation13], 128  }
0x1a36   :  { %1411 = vsyncadd [#allocation13], 4294967168 }
0x1a37   :  { %1010 = vsyncpa [#allocation4], 1 }
0x1a38   :  { %1011 = vsyncpa [#allocation7], 1 }
0x1a39   :  { %1012 = vsyncpa [#allocation10], 1 }
0x1a3a   :  { %1013 = vsyncpa [#allocation5], 1 }
0x1a3b   :  { %1014 = vsyncpa [#allocation13], 1 }

</bundles_post_ra>
